<compile_context>
chip_gen: v7x
topology: tpu7x:2x2x1
jax: 0.10.0
libtpu: 0.0.40
codegen_flags: <defaults>
</compile_context>

<pallas_src>
import functools

import jax
import jax.numpy as jnp
import numpy as np
from jax.experimental import pallas as pl
from jax.experimental.pallas import tpu as pltpu


# ----------------------------- helpers --------------------------------------


def _round_up(x, m):
    return ((x + m - 1) // m) * m


# ----------------------------- Pallas kernels -------------------------------


def _vsgc_step_kernel(a_ref, h_ref, x_ref, o_ref, acc_ref, *, acc_scale, x_scale):
    """One VSGC iteration, tiled over (row tiles, contraction tiles).

    acc += A_tile @ H_tile  (f32 MXU accumulation)
    finalize: o = acc_scale * acc + x_scale * x_tile
    """
    k = pl.program_id(1)

    @pl.when(k == 0)
    def _():
        acc_ref[...] = jnp.zeros_like(acc_ref)

    acc_ref[...] += jnp.dot(
        a_ref[...], h_ref[...], preferred_element_type=jnp.float32
    )

    @pl.when(k == pl.num_programs(1) - 1)
    def _():
        out = acc_scale * acc_ref[...] + x_scale * x_ref[...].astype(jnp.float32)
        o_ref[...] = out.astype(o_ref.dtype)


def _mlp_kernel(*refs, num_layers):
    """Fused MLP head over one row tile.

    refs = (h_ref, w0_ref, b0_ref, ..., w{L-1}_ref, b{L-1}_ref, o_ref)
    ReLU on all but the last layer; f32 epilogue math, matmuls in input dtype
    with f32 accumulation.
    """
    h_ref = refs[0]
    o_ref = refs[-1]
    compute_dtype = h_ref.dtype

    h = h_ref[...]
    for layer in range(num_layers):
        w_ref = refs[1 + 2 * layer]
        b_ref = refs[2 + 2 * layer]
        y = jnp.dot(h, w_ref[...], preferred_element_type=jnp.float32)
        y = y + b_ref[...].astype(jnp.float32)  # (1, out) broadcasts over rows
        if layer != num_layers - 1:
            y = jnp.maximum(y, 0.0)
            h = y.astype(compute_dtype)  # keep bf16 MXU path for next layer
        else:
            h = y
    o_ref[...] = h.astype(o_ref.dtype)


# ----------------------------- Python wrappers ------------------------------


def vsgc_propagate(a_hat_p, x_p, *, num_k, alpha, lambd, tm, tk):
    """K VSGC iterations on padded inputs; returns padded H of shape x_p.shape."""
    n_pad = a_hat_p.shape[0]
    f_pad = x_p.shape[1]
    assert n_pad % tm == 0 and n_pad % tk == 0

    denom = 1.0 / (float(alpha) + float(lambd))
    acc_scale = float(lambd) * denom
    x_scale = float(alpha) * denom

    itemsize = jnp.dtype(x_p.dtype).itemsize
    cost = pl.CostEstimate(
        flops=2 * n_pad * n_pad * f_pad,
        transcendentals=0,
        bytes_accessed=(n_pad * n_pad + 3 * n_pad * f_pad) * itemsize,
    )

    step = pl.pallas_call(
        functools.partial(
            _vsgc_step_kernel, acc_scale=acc_scale, x_scale=x_scale
        ),
        out_shape=jax.ShapeDtypeStruct((n_pad, f_pad), x_p.dtype),
        grid_spec=pltpu.PrefetchScalarGridSpec(
            num_scalar_prefetch=0,
            grid=(n_pad // tm, n_pad // tk),
            in_specs=[
                pl.BlockSpec((tm, tk), lambda i, k: (i, k)),      # A_hat tile
                pl.BlockSpec((tk, f_pad), lambda i, k: (k, 0)),   # H tile
                pl.BlockSpec((tm, f_pad), lambda i, k: (i, 0)),   # X tile (finalize)
            ],
            out_specs=pl.BlockSpec((tm, f_pad), lambda i, k: (i, 0)),
            scratch_shapes=[pltpu.VMEM((tm, f_pad), jnp.float32)],
        ),
        compiler_params=pltpu.CompilerParams(
            dimension_semantics=("parallel", "arbitrary")
        ),
        cost_estimate=cost,
    )

    h = x_p
    for _ in range(num_k):
        h = step(a_hat_p, h, x_p)
    return h


def mlp_forward(h_p, padded_params, *, tm):
    """Fused MLP head over padded activations; weights stay resident in VMEM."""
    n_pad, f_pad = h_p.shape
    assert n_pad % tm == 0
    num_layers = len(padded_params)
    out_pad = padded_params[-1][0].shape[1]

    in_specs = [pl.BlockSpec((tm, f_pad), lambda i: (i, 0))]
    args = [h_p]
    for w_p, b_p in padded_params:
        in_specs.append(pl.BlockSpec(w_p.shape, lambda i: (0, 0)))
        in_specs.append(pl.BlockSpec(b_p.shape, lambda i: (0, 0)))
        args.extend([w_p, b_p])

    return pl.pallas_call(
        functools.partial(_mlp_kernel, num_layers=num_layers),
        out_shape=jax.ShapeDtypeStruct((n_pad, out_pad), h_p.dtype),
        grid_spec=pltpu.PrefetchScalarGridSpec(
            num_scalar_prefetch=0,
            grid=(n_pad // tm,),
            in_specs=in_specs,
            out_specs=pl.BlockSpec((tm, out_pad), lambda i: (i, 0)),
        ),
        compiler_params=pltpu.CompilerParams(dimension_semantics=("parallel",)),
    )(*args)


def vsgc_net_forward(a_hat, x, params, *, num_k, alpha, lambd, tile_n=256):
    """Full VSGCNet forward. Pads to TPU-friendly shapes, runs Pallas kernels,
    slices back to the logical (N, num_classes) result."""
    n, f = x.shape
    num_classes = params[-1][0].shape[1]
    dtype = x.dtype

    n_pad = _round_up(n, tile_n)
    f_pad = _round_up(f, 128)

    # Zero-padded inputs: padded rows/cols of A_hat and X are zero, so padded
    # rows stay zero through propagation and never leak into valid rows.
    a_p = jnp.zeros((n_pad, n_pad), dtype).at[:n, :n].set(a_hat.astype(dtype))
    x_p = jnp.zeros((n_pad, f_pad), dtype).at[:n, :f].set(x.astype(dtype))

    h = vsgc_propagate(
        a_p, x_p, num_k=num_k, alpha=alpha, lambd=lambd, tm=tile_n, tk=tile_n
    )

    # Pad MLP weights/biases: feature dims to multiples of 128 (lane-dense).
    padded_params = []
    in_dim = f_pad
    for w, b in params:
        d_in, d_out = w.shape
        d_out_pad = _round_up(d_out, 128)
        w_p = jnp.zeros((in_dim, d_out_pad), dtype).at[:d_in, :d_out].set(
            w.astype(dtype)
        )
        b_p = jnp.zeros((1, d_out_pad), dtype).at[0, :d_out].set(b.astype(dtype))
        padded_params.append((w_p, b_p))
        in_dim = d_out_pad

    out = mlp_forward(h, padded_params, tm=tile_n)
    return out[:n, :num_classes]


# ----------------------------- reference (numpy, float64) -------------------


def vsgc_net_reference(a_hat, x, params, *, num_k, alpha, lambd):
    a = np.asarray(a_hat, np.float64)
    x0 = np.asarray(x, np.float64)
    h = x0.copy()
    for _ in range(num_k):
        h = (lambd * (a @ h) + alpha * x0) / (alpha + lambd)
    num_layers = len(params)
    for i, (w, b) in enumerate(params):
        h = h @ np.asarray(w, np.float64) + np.asarray(b, np.float64)[None, :]
        if i != num_layers - 1:
            h = np.maximum(h, 0.0)
    return h


# ----------------------------- main ------------------------------------------

if __name__ == "__main__":
    # Small, deterministic problem sizes.
    num_nodes = 16
    num_feats = 32
    num_hidden = 32
    num_classes = 8
    num_k = 4
    alpha = 1.0
    lambd = 1.0

    key = jax.random.PRNGKey(0)
    k_adj, k_x, k_w0, k_b0, k_w1, k_b1 = jax.random.split(key, 6)

    # Deterministic random graph -> dense normalized adjacency with self loops.
    rand = jax.random.uniform(k_adj, (num_nodes, num_nodes))
    adj = (rand < 0.3).astype(jnp.float32)
    adj = jnp.maximum(adj, adj.T)                                   # symmetrize
    adj = adj * (1.0 - jnp.eye(num_nodes)) + jnp.eye(num_nodes)     # self loops
    deg = jnp.maximum(adj.sum(axis=1), 1.0)
    d_inv_sqrt = 1.0 / jnp.sqrt(deg)
    a_hat = (adj * d_inv_sqrt[:, None] * d_inv_sqrt[None, :]).astype(jnp.float32)

    # Node features.
    x = jax.random.normal(k_x, (num_nodes, num_feats), dtype=jnp.float32)

    # MLP parameters (2 layers: feats -> hidden (relu), hidden -> classes).
    w0 = jax.random.normal(k_w0, (num_feats, num_hidden), dtype=jnp.float32) * 0.1
    b0 = jax.random.normal(k_b0, (num_hidden,), dtype=jnp.float32) * 0.01
    w1 = jax.random.normal(k_w1, (num_hidden, num_classes), dtype=jnp.float32) * 0.1
    b1 = jax.random.normal(k_b1, (num_classes,), dtype=jnp.float32) * 0.01
    params = [(w0, b0), (w1, b1)]

    ref = vsgc_net_reference(a_hat, x, params, num_k=num_k, alpha=alpha, lambd=lambd)

    # f32 run (tight-ish tolerance vs float64 numpy reference).
    out_f32 = vsgc_net_forward(a_hat, x, params, num_k=num_k, alpha=alpha, lambd=lambd)
    out_f32 = jax.block_until_ready(out_f32)
    np.testing.assert_allclose(
        np.asarray(out_f32, np.float64), ref, rtol=1e-3, atol=1e-3
    )
    assert out_f32.shape == (num_nodes, num_classes)

    # bf16-streaming run (halves A_hat HBM traffic, bf16 MXU, f32 accumulation).
    # Loose tolerance by design: inputs/activations are quantized to bf16.
    out_bf16 = vsgc_net_forward(
        a_hat.astype(jnp.bfloat16),
        x.astype(jnp.bfloat16),
        params,
        num_k=num_k,
        alpha=alpha,
        lambd=lambd,
    )
    out_bf16 = jax.block_until_ready(out_bf16)
    np.testing.assert_allclose(
        np.asarray(out_bf16, np.float64), ref, rtol=1e-1, atol=1e-1
    )

    print("KERNEL_OK")
</pallas_src>

<mosaic_0001>
module attributes {stable_mosaic.version = 11 : i64} {
  func.func @_vsgc_step_kernel(%arg0: i32, %arg1: i32, %arg2: memref<256x256xf32, #tpu.memory_space<vmem>>, %arg3: memref<256x128xf32, #tpu.memory_space<vmem>>, %arg4: memref<256x128xf32, #tpu.memory_space<vmem>>, %arg5: memref<256x128xf32, #tpu.memory_space<vmem>>, %arg6: memref<256x128xf32, #tpu.memory_space<vmem>>) attributes {dimension_semantics = [#tpu.dimension_semantics<parallel>, #tpu.dimension_semantics<arbitrary>], iteration_bounds = array<i64: 1, 1>, scalar_prefetch = 0 : i64, scratch_operands = 1 : i64, tpu.core_type = #tpu.core_type<tc>, window_params = [{transform_indices = @transform_0, window_bounds = array<i64: 256, 256>}, {transform_indices = @transform_1, window_bounds = array<i64: 256, 128>}, {transform_indices = @transform_2, window_bounds = array<i64: 256, 128>}, {transform_indices = @transform_3, window_bounds = array<i64: 256, 128>}]} {
    %c0_i32 = arith.constant 0 : i32
    %0 = arith.cmpi eq, %arg1, %c0_i32 : i32
    %1 = arith.extui %0 : i1 to i32
    %c0_i32_0 = arith.constant 0 : i32
    %2 = arith.cmpi ne, %1, %c0_i32_0 : i32
    scf.if %2 {
      %cst_10 = arith.constant 0.000000e+00 : f32
      %12 = vector.broadcast %cst_10 : f32 to vector<256x128xf32>
      %c0_11 = arith.constant 0 : index
      %c0_12 = arith.constant 0 : index
      %13 = vector.load %arg6[%c0_11, %c0_12] : memref<256x128xf32, #tpu.memory_space<vmem>>, vector<256x128xf32>
      tpu.vector_store %arg6[%c0_11, %c0_12], %12 {strides = array<i32>} : memref<256x128xf32, #tpu.memory_space<vmem>>, vector<256x128xf32>,
    } else {
    }
    %c0 = arith.constant 0 : index
    %c0_1 = arith.constant 0 : index
    %3 = vector.load %arg6[%c0, %c0_1] : memref<256x128xf32, #tpu.memory_space<vmem>>, vector<256x128xf32>
    %c0_2 = arith.constant 0 : index
    %c0_3 = arith.constant 0 : index
    %4 = vector.load %arg2[%c0_2, %c0_3] : memref<256x256xf32, #tpu.memory_space<vmem>>, vector<256x256xf32>
    %c0_4 = arith.constant 0 : index
    %c0_5 = arith.constant 0 : index
    %5 = vector.load %arg3[%c0_4, %c0_5] : memref<256x128xf32, #tpu.memory_space<vmem>>, vector<256x128xf32>
    %cst = arith.constant dense<0.000000e+00> : vector<256x128xf32>
    %6 = tpu.matmul %4, %5, %cst {dimension_numbers = #tpu.dot_dimension_numbers<[1], [0], [0], [1], [0, 0, 1, 1], [], []>} : vector<256x256xf32>, vector<256x128xf32>, vector<256x128xf32> -> vector<256x128xf32>
    %7 = arith.addf %3, %6 : vector<256x128xf32>
    %c0_6 = arith.constant 0 : index
    %c0_7 = arith.constant 0 : index
    %8 = vector.load %arg6[%c0_6, %c0_7] : memref<256x128xf32, #tpu.memory_space<vmem>>, vector<256x128xf32>
    tpu.vector_store %arg6[%c0_6, %c0_7], %7 {strides = array<i32>} : memref<256x128xf32, #tpu.memory_space<vmem>>, vector<256x128xf32>,
    %c0_i32_8 = arith.constant 0 : i32
    %9 = arith.cmpi eq, %arg1, %c0_i32_8 : i32
    %10 = arith.extui %9 : i1 to i32
    %c0_i32_9 = arith.constant 0 : i32
    %11 = arith.cmpi ne, %10, %c0_i32_9 : i32
    scf.if %11 {
      %c0_10 = arith.constant 0 : index
      %c0_11 = arith.constant 0 : index
      %12 = vector.load %arg6[%c0_10, %c0_11] : memref<256x128xf32, #tpu.memory_space<vmem>>, vector<256x128xf32>
      %cst_12 = arith.constant 5.000000e-01 : f32
      %13 = vector.broadcast %cst_12 : f32 to vector<256x128xf32>
      %14 = arith.mulf %13, %12 : vector<256x128xf32>
      %c0_13 = arith.constant 0 : index
      %c0_14 = arith.constant 0 : index
      %15 = vector.load %arg4[%c0_13, %c0_14] : memref<256x128xf32, #tpu.memory_space<vmem>>, vector<256x128xf32>
      %cst_15 = arith.constant 5.000000e-01 : f32
      %16 = vector.broadcast %cst_15 : f32 to vector<256x128xf32>
      %17 = arith.mulf %16, %15 : vector<256x128xf32>
      %18 = arith.addf %14, %17 : vector<256x128xf32>
      %c0_16 = arith.constant 0 : index
      %c0_17 = arith.constant 0 : index
      %19 = vector.load %arg5[%c0_16, %c0_17] : memref<256x128xf32, #tpu.memory_space<vmem>>, vector<256x128xf32>
      tpu.vector_store %arg5[%c0_16, %c0_17], %18 {strides = array<i32>} : memref<256x128xf32, #tpu.memory_space<vmem>>, vector<256x128xf32>,
    } else {
    }
    return
  }
  func.func @transform_0(%arg0: i32, %arg1: i32) -> (i32, i32) {
    %c0_i32 = arith.constant 0 : i32
    return %arg0, %arg1 : i32, i32
  }
  func.func @transform_1(%arg0: i32, %arg1: i32) -> (i32, i32) {
    %c0_i32 = arith.constant 0 : i32
    %c0_i32_0 = arith.constant 0 : i32
    return %arg1, %c0_i32 : i32, i32
  }
  func.func @transform_2(%arg0: i32, %arg1: i32) -> (i32, i32) {
    %c0_i32 = arith.constant 0 : i32
    %c0_i32_0 = arith.constant 0 : i32
    return %arg0, %c0_i32 : i32, i32
  }
  func.func @transform_3(%arg0: i32, %arg1: i32) -> (i32, i32) {
    %c0_i32 = arith.constant 0 : i32
    %c0_i32_0 = arith.constant 0 : i32
    return %arg0, %c0_i32 : i32, i32
  }
}

</mosaic_0001>

<bundles_post_ra>
// kernel: tpu_custom_call.1
= control target key start
LH: loop header
LB: loop body
LE: loop exit
PB: predicated region body
PF: predicated region fallthrough
CT: control target
= control target key end

     0   :  { %8 = vsyncpa [#allocation4], 0  ;;  %s1023_s0 = inlined_call_operand.hbm [shape: f32[256,256], index: 0, kind: input, shape index: {}]   ;;  %s1024_s1 = inlined_call_operand.hbm [shape: f32[256,128], index: 1, kind: input, shape index: {}]   ;;  %s1025_s2 = inlined_call_operand.hbm [shape: f32[256,128], index: 2, kind: input, shape index: {}]   ;;  %s1026_s3 = inlined_call_operand.hbm [shape: f32[256,128], index: 3, kind: output, shape index: {}]  }
   0x1   :  { %9 = vsyncpa [#allocation7], 0 }
   0x2   :  { %10 = vsyncpa [#allocation5], 0  ;;  %s905_s12 = smov [#allocation6]   ;;  %s811_s16 = scalar_lea.hbm %s1024_s1, 4096 }
   0x3   :  { %s28_s13 = sshll.u32 %s905_s12, 4  ;;  %p812_p0 = scmp.ne.s32.totalorder %s1024_s1, %s811_s16  ;;  %s29_s13 = int_to_ptr.vmem [resolvable:$true] %s28_s13 }
   0x4   :  { %p815_p1 = scmp.lt.u32.totalorder %s811_s16, %s1024_s1 }
   0x6   :  { %p817_p2 = pnand %p815_p1, %p812_p0 }
   0x8   :  { %820 = shalt.err (!%p817_p2)
}
   0x9   :  { %s821_s21 = scalar_lea.vmem %s29_s13, 4096  ;;  %p826_p4 = scmp.lt.s32.totalorder %s29_s13, %s29_s13 }
   0xa   :  { %p822_p3 = scmp.ne.s32.totalorder %s29_s13, %s821_s21  ;;  %p827_p5 = scmp.lt.s32.totalorder %s821_s21, %s821_s21 }
   0xc   :  { %p828_p6 = por %p827_p5, %p826_p4 }
   0xe   :  { %p829_p7 = pnand %p828_p6, %p822_p3 }
  0x10   :  { %832 = shalt.err (!%p829_p7)
}
  0x11   :  { %s906_s22 = smov 128   ;;  %s907_s23 = smov 8  }
  0x12   :  { %34 = dma.hbm_to_vmem [thread:$0]  %s1024_s1, 4096, %s29_s13, [#allocation7], %s906_s22, %s906_s22, %s907_s23  }
  0x13   :  { %s908_s26 = smov [#allocation3]   ;;  %s833_s30 = scalar_lea.hbm %s1023_s0, 8192 }
  0x14   :  { %s16_s27 = sshll.u32 %s908_s26, 4  ;;  %p834_p8 = scmp.ne.s32.totalorder %s1023_s0, %s833_s30  ;;  %s17_s27 = int_to_ptr.vmem [resolvable:$true] %s16_s27 }
  0x15   :  { %p837_p9 = scmp.lt.u32.totalorder %s833_s30, %s1023_s0 }
  0x17   :  { %p839_p10 = pnand %p837_p9, %p834_p8 }
  0x19   :  { %842 = shalt.err (!%p839_p10)
}
  0x1a   :  { %s843_s8 = scalar_lea.vmem %s17_s27, 8192  ;;  %p848_p12 = scmp.lt.s32.totalorder %s17_s27, %s17_s27 }
  0x1b   :  { %p844_p11 = scmp.ne.s32.totalorder %s17_s27, %s843_s8  ;;  %p849_p13 = scmp.lt.s32.totalorder %s843_s8, %s843_s8 }
  0x1d   :  { %p850_p0 = por %p849_p13, %p848_p12 }
  0x1f   :  { %p851_p1 = pnand %p850_p0, %p844_p11 }
  0x21   :  { %854 = shalt.err (!%p851_p1)
}
  0x22   :  { %s909_s1 = smov 256   ;;  %s910_s9 = smov 16  }
  0x23   :  { %22 = dma.hbm_to_vmem [thread:$0]  %s1023_s0, 8192, %s17_s27, [#allocation4], %s909_s1, %s909_s1, %s910_s9  }
  0x24   :  { %s911_s12 = smov [#allocation8]   ;;  %s855_s16 = scalar_lea.hbm %s1025_s2, 4096 }
  0x25   :  { %s40_s13 = sshll.u32 %s911_s12, 4  ;;  %p856_p2 = scmp.ne.s32.totalorder %s1025_s2, %s855_s16  ;;  %s41_s13 = int_to_ptr.vmem [resolvable:$true] %s40_s13 }
  0x26   :  { %p859_p3 = scmp.lt.u32.totalorder %s855_s16, %s1025_s2 }
  0x28   :  { %p861_p4 = pnand %p859_p3, %p856_p2 }
  0x2a   :  { %864 = shalt.err (!%p861_p4)
}
  0x2b   :  { %s865_s21 = scalar_lea.vmem %s41_s13, 4096  ;;  %p870_p6 = scmp.lt.s32.totalorder %s41_s13, %s41_s13 }
  0x2c   :  { %p866_p5 = scmp.ne.s32.totalorder %s41_s13, %s865_s21  ;;  %p871_p7 = scmp.lt.s32.totalorder %s865_s21, %s865_s21 }
  0x2e   :  { %p872_p8 = por %p871_p7, %p870_p6 }
  0x30   :  { %p873_p9 = pnand %p872_p8, %p866_p5 }
  0x32   :  { %876 = shalt.err (!%p873_p9)
}
  0x33   :  { %46 = dma.hbm_to_vmem [thread:$0]  %s1025_s2, 4096, %s41_s13, [#allocation7], %s906_s22, %s906_s22, %s907_s23  }
  0x34   :  { %899 = dma.done.wait [#allocation4], 8192  }
  0x35   :  { %900 = vsyncadd [#allocation4], 4294959104 }
  0x36   :  { %901 = dma.done.wait [#allocation7], 8192  }
  0x37   :  { %902 = vsyncadd [#allocation7], 4294959104  ;;  %v912_v0 = vmov 0.0|0.0   ;;  %v188_v1 = vld [vmem:[#allocation6] sm:$0xff]  ;;  %v189_v2 = vld [vmem:[#allocation6 + $0x8] sm:$0xff]  ;;  %s913_s2 = smov [#allocation9]  }
  0x38   :  { %722 = vmatprep.subr.bf16.mxu0 %v912_v0  ;;  %770 = vmatprep.subr.bf16.mxu1 %v912_v0  ;;  %v190_v3 = vld [vmem:[#allocation6 + $0x10] sm:$0xff]  ;;  %v723_v4 = vpack.c.bf16 %v189_v2, %v188_v1  ;;  %v191_v5 = vld [vmem:[#allocation6 + $0x18] sm:$0xff]  ;;  %v192_v7 = vld [vmem:[#allocation6 + $0x20] sm:$0xff]  ;;  %s709_s25 = sshll.u32 %s913_s2, 4  ;;  %s710_s25 = int_to_ptr.vmem [resolvable:$true] %s709_s25 }
  0x39   :  { %v726_v6 = vpack.c.bf16 %v191_v5, %v190_v3  ;;  %v193_v8 = vld [vmem:[#allocation6 + $0x28] sm:$0xff]  ;;  %v194_v10 = vld [vmem:[#allocation6 + $0x30] sm:$0xff]  ;;  %v195_v11 = vld [vmem:[#allocation6 + $0x38] sm:$0xff]  ;;  %s877_s26 = scalar_lea.vmem %s710_s25, 4096  ;;  %p882_p11 = scmp.lt.s32.totalorder %s710_s25, %s710_s25 }
  0x3a   :  { %724 = vmatpush1.bf16.msra.mxu0 %v723_v4  ;;  %786 = vmatpush1.bf16.msra.mxu1 %v723_v4  ;;  %v729_v9 = vpack.c.bf16 %v193_v8, %v192_v7  ;;  %v125_v12 = vld [vmem:[#allocation3 + $0x8] sm:$0xff]  ;;  %v732_v13 = vpack.c.bf16 %v195_v11, %v194_v10  ;;  %v196_v15 = vld [vmem:[#allocation6 + $0x40] sm:$0xff]  ;;  %v198_v18 = vld [vmem:[#allocation6 + $0x50] sm:$0xff]  ;;  %p878_p10 = scmp.ne.s32.totalorder %s710_s25, %s877_s26  ;;  %p883_p12 = scmp.lt.s32.totalorder %s877_s26, %s877_s26 }
  0x3b   :  { %725 = vmatprep.subr.bf16.mxu0 %v912_v0  ;;  %771 = vmatprep.subr.bf16.mxu1 %v912_v0  ;;  %v157_v14 = vld [vmem:[#allocation3 + $0x108] sm:$0xff]  ;;  %v199_v19 = vld [vmem:[#allocation6 + $0x58] sm:$0xff]  ;;  %v200_v21 = vld [vmem:[#allocation6 + $0x60] sm:$0xff] }
  0x3c   :  { %v197_v16 = vld [vmem:[#allocation6 + $0x48] sm:$0xff]  ;;  %284 = vmatprep.mubr.f32.mxu0 %v125_v12  ;;  %364 = vmatprep.mubr.f32.mxu1 %v157_v14  ;;  %v738_v20 = vpack.c.bf16 %v199_v19, %v198_v18  ;;  %v202_v24 = vld [vmem:[#allocation6 + $0x70] sm:$0xff]  ;;  %v203_v25 = vld [vmem:[#allocation6 + $0x78] sm:$0xff]  ;;  %p884_p13 = por %p883_p12, %p882_p11 }
  0x3d   :  { %v735_v17 = vpack.c.bf16 %v197_v16, %v196_v15  ;;  %v201_v22 = vld [vmem:[#allocation6 + $0x68] sm:$0xff]  ;;  %v744_v26 = vpack.c.bf16 %v203_v25, %v202_v24  ;;  %v204_v27 = vld [vmem:[#allocation6 + $0x80] sm:$0xff]  ;;  %v206_v30 = vld [vmem:[#allocation6 + $0x90] sm:$0xff] }
  0x3e   :  { %727 = vmatpush1.bf16.msra.mxu0 %v726_v6  ;;  %787 = vmatpush1.bf16.msra.mxu1 %v726_v6  ;;  %v741_v23 = vpack.c.bf16 %v201_v22, %v200_v21  ;;  %v205_v28 = vld [vmem:[#allocation6 + $0x88] sm:$0xff]  ;;  %v207_v31 = vld [vmem:[#allocation6 + $0x98] sm:$0xff]  ;;  %v208_v33 = vld [vmem:[#allocation6 + $0xa0] sm:$0xff]  ;;  %p885_p0 = pnand %p884_p13, %p878_p10 }
  0x3f   :  { %728 = vmatprep.subr.bf16.mxu0 %v912_v0  ;;  %772 = vmatprep.subr.bf16.mxu1 %v912_v0  ;;  %v747_v29 = vpack.c.bf16 %v205_v28, %v204_v27  ;;  %v750_v32 = vpack.c.bf16 %v207_v31, %v206_v30  ;;  %v209_v34 = vld [vmem:[#allocation6 + $0xa8] sm:$0xff]  ;;  %v210_v36 = vld [vmem:[#allocation6 + $0xb0] sm:$0xff]  ;;  %v211_v37 = vld [vmem:[#allocation6 + $0xb8] sm:$0xff] }
  0x40   :  { %v753_v35 = vpack.c.bf16 %v209_v34, %v208_v33  ;;  %v756_v38 = vpack.c.bf16 %v211_v37, %v210_v36  ;;  %v212_v39 = vld [vmem:[#allocation6 + $0xc0] sm:$0xff]  ;;  %v213_v40 = vld [vmem:[#allocation6 + $0xc8] sm:$0xff]  ;;  %v214_v42 = vld [vmem:[#allocation6 + $0xd0] sm:$0xff] }
  0x41   :  { %v759_v41 = vpack.c.bf16 %v213_v40, %v212_v39  ;;  %v215_v43 = vld [vmem:[#allocation6 + $0xd8] sm:$0xff]  ;;  %v216_v45 = vld [vmem:[#allocation6 + $0xe0] sm:$0xff]  ;;  %v217_v46 = vld [vmem:[#allocation6 + $0xe8] sm:$0xff] }
  0x42   :  { %730 = vmatpush1.bf16.msra.mxu0 %v729_v9  ;;  %788 = vmatpush1.bf16.msra.mxu1 %v729_v9  ;;  %v762_v44 = vpack.c.bf16 %v215_v43, %v214_v42  ;;  %v765_v47 = vpack.c.bf16 %v217_v46, %v216_v45  ;;  %v218_v48 = vld [vmem:[#allocation6 + $0xf0] sm:$0xff]  ;;  %v219_v49 = vld [vmem:[#allocation6 + $0xf8] sm:$0xff]  ;;  %v124_v51 = vld [vmem:[#allocation3] sm:$0xff] }
  0x43   :  { %731 = vmatprep.subr.bf16.mxu0 %v912_v0  ;;  %773 = vmatprep.subr.bf16.mxu1 %v912_v0  ;;  %v768_v50 = vpack.c.bf16 %v219_v49, %v218_v48  ;;  %v156_v52 = vld [vmem:[#allocation3 + $0x100] sm:$0xff]  ;;  %v127_v53 = vld [vmem:[#allocation3 + $0x18] sm:$0xff]  ;;  %v126_v55 = vld [vmem:[#allocation3 + $0x10] sm:$0xff] }
  0x44   :  { %v159_v54 = vld [vmem:[#allocation3 + $0x118] sm:$0xff]  ;;  %v158_v56 = vld [vmem:[#allocation3 + $0x110] sm:$0xff]  ;;  %v129_v57 = vld [vmem:[#allocation3 + $0x28] sm:$0xff] }
  0x45   :  { %v161_v58 = vld [vmem:[#allocation3 + $0x128] sm:$0xff]  ;;  %v128_v59 = vld [vmem:[#allocation3 + $0x20] sm:$0xff]  ;;  %v131_v61 = vld [vmem:[#allocation3 + $0x38] sm:$0xff] }
  0x46   :  { %733 = vmatpush1.bf16.msra.mxu0 %v732_v13  ;;  %789 = vmatpush1.bf16.msra.mxu1 %v732_v13  ;;  %v160_v60 = vld [vmem:[#allocation3 + $0x120] sm:$0xff]  ;;  %v163_v62 = vld [vmem:[#allocation3 + $0x138] sm:$0xff]  ;;  %v130_v63 = vld [vmem:[#allocation3 + $0x30] sm:$0xff] }
  0x47   :  { %734 = vmatprep.subr.bf16.mxu0 %v912_v0  ;;  %774 = vmatprep.subr.bf16.mxu1 %v912_v0  ;;  %v133_v1 = vld [vmem:[#allocation3 + $0x48] sm:$0xff]  ;;  %v132_v3 = vld [vmem:[#allocation3 + $0x40] sm:$0xff]  ;;  %v135_v5 = vld [vmem:[#allocation3 + $0x58] sm:$0xff] }
  0x48   :  { %v165_v2 = vld [vmem:[#allocation3 + $0x148] sm:$0xff]  ;;  %v164_v4 = vld [vmem:[#allocation3 + $0x140] sm:$0xff]  ;;  %v167_v6 = vld [vmem:[#allocation3 + $0x158] sm:$0xff] }
  0x49   :  { %v134_v7 = vld [vmem:[#allocation3 + $0x50] sm:$0xff]  ;;  %v137_v9 = vld [vmem:[#allocation3 + $0x68] sm:$0xff]  ;;  %v136_v11 = vld [vmem:[#allocation3 + $0x60] sm:$0xff] }
  0x4a   :  { %736 = vmatpush1.bf16.msra.mxu0 %v735_v17  ;;  %790 = vmatpush1.bf16.msra.mxu1 %v735_v17  ;;  %v166_v8 = vld [vmem:[#allocation3 + $0x150] sm:$0xff]  ;;  %v169_v10 = vld [vmem:[#allocation3 + $0x168] sm:$0xff]  ;;  %v168_v12 = vld [vmem:[#allocation3 + $0x160] sm:$0xff] }
  0x4b   :  { %737 = vmatprep.subr.bf16.mxu0 %v912_v0  ;;  %775 = vmatprep.subr.bf16.mxu1 %v912_v0  ;;  %v139_v13 = vld [vmem:[#allocation3 + $0x78] sm:$0xff]  ;;  %v138_v15 = vld [vmem:[#allocation3 + $0x70] sm:$0xff]  ;;  %v141_v17 = vld [vmem:[#allocation3 + $0x88] sm:$0xff] }
  0x4c   :  { %v171_v14 = vld [vmem:[#allocation3 + $0x178] sm:$0xff]  ;;  %v170_v16 = vld [vmem:[#allocation3 + $0x170] sm:$0xff]  ;;  %v173_v18 = vld [vmem:[#allocation3 + $0x188] sm:$0xff] }
  0x4d   :  { %v140_v19 = vld [vmem:[#allocation3 + $0x80] sm:$0xff]  ;;  %v143_v21 = vld [vmem:[#allocation3 + $0x98] sm:$0xff]  ;;  %v174_v24 = vld [vmem:[#allocation3 + $0x190] sm:$0xff] }
  0x4e   :  { %739 = vmatpush1.bf16.msra.mxu0 %v738_v20  ;;  %791 = vmatpush1.bf16.msra.mxu1 %v738_v20  ;;  %v172_v20 = vld [vmem:[#allocation3 + $0x180] sm:$0xff]  ;;  %v175_v22 = vld [vmem:[#allocation3 + $0x198] sm:$0xff]  ;;  %v145_v25 = vld [vmem:[#allocation3 + $0xa8] sm:$0xff] }
  0x4f   :  { %740 = vmatprep.subr.bf16.mxu0 %v912_v0  ;;  %776 = vmatprep.subr.bf16.mxu1 %v912_v0  ;;  %v144_v27 = vld [vmem:[#allocation3 + $0xa0] sm:$0xff]  ;;  %v179_v30 = vld [vmem:[#allocation3 + $0x1b8] sm:$0xff]  ;;  %v146_v31 = vld [vmem:[#allocation3 + $0xb0] sm:$0xff] }
  0x50   :  { %v176_v28 = vld [vmem:[#allocation3 + $0x1a0] sm:$0xff]  ;;  %v149_v33 = vld [vmem:[#allocation3 + $0xc8] sm:$0xff]  ;;  %v151_v37 = vld [vmem:[#allocation3 + $0xd8] sm:$0xff] }
  0x51   :  { %v181_v34 = vld [vmem:[#allocation3 + $0x1c8] sm:$0xff]  ;;  %v180_v36 = vld [vmem:[#allocation3 + $0x1c0] sm:$0xff]  ;;  %v150_v39 = vld [vmem:[#allocation3 + $0xd0] sm:$0xff] }
  0x52   :  { %742 = vmatpush1.bf16.msra.mxu0 %v741_v23  ;;  %792 = vmatpush1.bf16.msra.mxu1 %v741_v23  ;;  %v142_v23 = vld [vmem:[#allocation3 + $0x90] sm:$0xff]  ;;  %v185_v42 = vld [vmem:[#allocation3 + $0x1e8] sm:$0xff]  ;;  %v152_v43 = vld [vmem:[#allocation3 + $0xe0] sm:$0xff] }
  0x53   :  { %743 = vmatprep.subr.bf16.mxu0 %v912_v0  ;;  %777 = vmatprep.subr.bf16.mxu1 %v912_v0  ;;  %v182_v40 = vld [vmem:[#allocation3 + $0x1d0] sm:$0xff]  ;;  %v155_v45 = vld [vmem:[#allocation3 + $0xf8] sm:$0xff]  ;;  %v576_v49 = vld [vmem:[#allocation8] sm:$0xff] }
  0x54   :  { %v187_v46 = vld [vmem:[#allocation3 + $0x1f8] sm:$0xff]  ;;  %v186_v48 = vld [vmem:[#allocation3 + $0x1f0] sm:$0xff] }
  0x56   :  { %745 = vmatpush1.bf16.msra.mxu0 %v744_v26  ;;  %793 = vmatpush1.bf16.msra.mxu1 %v744_v26  ;;  %v177_v26 = vld [vmem:[#allocation3 + $0x1a8] sm:$0xff] }
  0x57   :  { %746 = vmatprep.subr.bf16.mxu0 %v912_v0  ;;  %778 = vmatprep.subr.bf16.mxu1 %v912_v0 }
  0x5a   :  { %748 = vmatpush1.bf16.msra.mxu0 %v747_v29  ;;  %794 = vmatpush1.bf16.msra.mxu1 %v747_v29  ;;  %v147_v29 = vld [vmem:[#allocation3 + $0xb8] sm:$0xff] }
  0x5b   :  { %749 = vmatprep.subr.bf16.mxu0 %v912_v0  ;;  %779 = vmatprep.subr.bf16.mxu1 %v912_v0 }
  0x5e   :  { %751 = vmatpush1.bf16.msra.mxu0 %v750_v32  ;;  %795 = vmatpush1.bf16.msra.mxu1 %v750_v32  ;;  %v178_v32 = vld [vmem:[#allocation3 + $0x1b0] sm:$0xff] }
  0x5f   :  { %752 = vmatprep.subr.bf16.mxu0 %v912_v0  ;;  %780 = vmatprep.subr.bf16.mxu1 %v912_v0 }
  0x62   :  { %754 = vmatpush1.bf16.msra.mxu0 %v753_v35  ;;  %796 = vmatpush1.bf16.msra.mxu1 %v753_v35  ;;  %v148_v35 = vld [vmem:[#allocation3 + $0xc0] sm:$0xff] }
  0x63   :  { %755 = vmatprep.subr.bf16.mxu0 %v912_v0  ;;  %781 = vmatprep.subr.bf16.mxu1 %v912_v0 }
  0x66   :  { %757 = vmatpush1.bf16.msra.mxu0 %v756_v38  ;;  %797 = vmatpush1.bf16.msra.mxu1 %v756_v38  ;;  %v183_v38 = vld [vmem:[#allocation3 + $0x1d8] sm:$0xff] }
  0x67   :  { %758 = vmatprep.subr.bf16.mxu0 %v912_v0  ;;  %782 = vmatprep.subr.bf16.mxu1 %v912_v0 }
  0x6a   :  { %760 = vmatpush1.bf16.msra.mxu0 %v759_v41  ;;  %798 = vmatpush1.bf16.msra.mxu1 %v759_v41  ;;  %v153_v41 = vld [vmem:[#allocation3 + $0xe8] sm:$0xff] }
  0x6b   :  { %761 = vmatprep.subr.bf16.mxu0 %v912_v0  ;;  %783 = vmatprep.subr.bf16.mxu1 %v912_v0 }
  0x6e   :  { %763 = vmatpush1.bf16.msra.mxu0 %v762_v44  ;;  %799 = vmatpush1.bf16.msra.mxu1 %v762_v44  ;;  %v184_v44 = vld [vmem:[#allocation3 + $0x1e0] sm:$0xff] }
  0x6f   :  { %764 = vmatprep.subr.bf16.mxu0 %v912_v0  ;;  %784 = vmatprep.subr.bf16.mxu1 %v912_v0 }
  0x72   :  { %766 = vmatpush1.bf16.msra.mxu0 %v765_v47  ;;  %800 = vmatpush1.bf16.msra.mxu1 %v765_v47  ;;  %v154_v47 = vld [vmem:[#allocation3 + $0xf0] sm:$0xff] }
  0x73   :  { %767 = vmatprep.subr.bf16.mxu0 %v912_v0  ;;  %785 = vmatprep.subr.bf16.mxu1 %v912_v0  ;;  %v162_v0 = vld [vmem:[#allocation3 + $0x130] sm:$0xff] }
  0x76   :  { %769 = vmatpush1.bf16.msra.mxu0 %v768_v50  ;;  %801 = vmatpush1.bf16.msra.mxu1 %v768_v50  ;;  %v592_v50 = vld [vmem:[#allocation8 + $0x80] sm:$0xff] }
  0x79   :  { %285 = vmatmul.mubr.f32.vlgmr.msra.gmra.mrb[0].mxu0 %v124_v51  ;;  %365 = vmatmul.mubr.f32.vlgmr.msra.gmra.mrb[0].mxu1 %v156_v52  ;;  %v608_v51 = vmul.f32 0.5, %v576_v49  ;;  %v624_v52 = vmul.f32 0.5, %v592_v50 }
  0x7a   :  { %289 = vmatprep.mubr.f32.mxu0 %v127_v53  ;;  %369 = vmatprep.mubr.f32.mxu1 %v159_v54 }
  0x7d   :  { %290 = vmatmul.mubr.f32.gmra.mrb[2].mxu0 %v126_v55  ;;  %370 = vmatmul.mubr.f32.gmra.mrb[2].mxu1 %v158_v56  ;;  %v577_v55 = vld [vmem:[#allocation8 + $0x8] sm:$0xff] }
  0x7e   :  { %294 = vmatprep.mubr.f32.mxu0 %v129_v57  ;;  %374 = vmatprep.mubr.f32.mxu1 %v161_v58  ;;  %v593_v56 = vld [vmem:[#allocation8 + $0x88] sm:$0xff] }
  0x81   :  { %295 = vmatmul.mubr.f32.gmra.mrb[4].mxu0 %v128_v59  ;;  %375 = vmatmul.mubr.f32.gmra.mrb[4].mxu1 %v160_v60 }
  0x82   :  { %299 = vmatprep.mubr.f32.mxu0 %v131_v61  ;;  %379 = vmatprep.mubr.f32.mxu1 %v163_v62 }
  0x85   :  { %300 = vmatmul.mubr.f32.gmra.mrb[6].mxu0 %v130_v63  ;;  %380 = vmatmul.mubr.f32.gmra.mrb[6].mxu1 %v162_v0  ;;  %v609_v63 = vmul.f32 0.5, %v577_v55  ;;  %v625_v0 = vmul.f32 0.5, %v593_v56 }
  0x86   :  { %304 = vmatprep.mubr.f32.mxu0 %v133_v1  ;;  %384 = vmatprep.mubr.f32.mxu1 %v165_v2 }
  0x89   :  { %305 = vmatmul.mubr.f32.gmra.mrb[8].mxu0 %v132_v3  ;;  %385 = vmatmul.mubr.f32.gmra.mrb[8].mxu1 %v164_v4  ;;  %v578_v3 = vld [vmem:[#allocation8 + $0x10] sm:$0xff] }
  0x8a   :  { %309 = vmatprep.mubr.f32.mxu0 %v135_v5  ;;  %389 = vmatprep.mubr.f32.mxu1 %v167_v6  ;;  %v594_v4 = vld [vmem:[#allocation8 + $0x90] sm:$0xff] }
  0x8d   :  { %310 = vmatmul.mubr.f32.gmra.mrb[10].mxu0 %v134_v7  ;;  %390 = vmatmul.mubr.f32.gmra.mrb[10].mxu1 %v166_v8 }
  0x8e   :  { %314 = vmatprep.mubr.f32.mxu0 %v137_v9  ;;  %394 = vmatprep.mubr.f32.mxu1 %v169_v10 }
  0x91   :  { %315 = vmatmul.mubr.f32.gmra.mrb[12].mxu0 %v136_v11  ;;  %395 = vmatmul.mubr.f32.gmra.mrb[12].mxu1 %v168_v12  ;;  %v610_v11 = vmul.f32 0.5, %v578_v3  ;;  %v626_v12 = vmul.f32 0.5, %v594_v4 }
  0x92   :  { %319 = vmatprep.mubr.f32.mxu0 %v139_v13  ;;  %399 = vmatprep.mubr.f32.mxu1 %v171_v14 }
  0x95   :  { %320 = vmatmul.mubr.f32.gmra.mrb[14].mxu0 %v138_v15  ;;  %400 = vmatmul.mubr.f32.gmra.mrb[14].mxu1 %v170_v16  ;;  %v579_v15 = vld [vmem:[#allocation8 + $0x18] sm:$0xff] }
  0x96   :  { %324 = vmatprep.mubr.f32.mxu0 %v141_v17  ;;  %404 = vmatprep.mubr.f32.mxu1 %v173_v18  ;;  %v595_v16 = vld [vmem:[#allocation8 + $0x98] sm:$0xff] }
  0x99   :  { %325 = vmatmul.mubr.f32.gmra.mrb[16].mxu0 %v140_v19  ;;  %405 = vmatmul.mubr.f32.gmra.mrb[16].mxu1 %v172_v20 }
  0x9a   :  { %329 = vmatprep.mubr.f32.mxu0 %v143_v21  ;;  %409 = vmatprep.mubr.f32.mxu1 %v175_v22 }
  0x9d   :  { %330 = vmatmul.mubr.f32.gmra.mrb[18].mxu0 %v142_v23  ;;  %410 = vmatmul.mubr.f32.gmra.mrb[18].mxu1 %v174_v24  ;;  %v611_v23 = vmul.f32 0.5, %v579_v15  ;;  %v627_v24 = vmul.f32 0.5, %v595_v16 }
  0x9e   :  { %334 = vmatprep.mubr.f32.mxu0 %v145_v25  ;;  %414 = vmatprep.mubr.f32.mxu1 %v177_v26 }
  0xa1   :  { %335 = vmatmul.mubr.f32.gmra.mrb[20].mxu0 %v144_v27  ;;  %415 = vmatmul.mubr.f32.gmra.mrb[20].mxu1 %v176_v28  ;;  %v580_v27 = vld [vmem:[#allocation8 + $0x20] sm:$0xff] }
  0xa2   :  { %339 = vmatprep.mubr.f32.mxu0 %v147_v29  ;;  %419 = vmatprep.mubr.f32.mxu1 %v179_v30  ;;  %v596_v28 = vld [vmem:[#allocation8 + $0xa0] sm:$0xff] }
  0xa5   :  { %340 = vmatmul.mubr.f32.gmra.mrb[22].mxu0 %v146_v31  ;;  %420 = vmatmul.mubr.f32.gmra.mrb[22].mxu1 %v178_v32 }
  0xa6   :  { %344 = vmatprep.mubr.f32.mxu0 %v149_v33  ;;  %424 = vmatprep.mubr.f32.mxu1 %v181_v34 }
  0xa9   :  { %345 = vmatmul.mubr.f32.gmra.mrb[24].mxu0 %v148_v35  ;;  %425 = vmatmul.mubr.f32.gmra.mrb[24].mxu1 %v180_v36  ;;  %v612_v35 = vmul.f32 0.5, %v580_v27  ;;  %v628_v36 = vmul.f32 0.5, %v596_v28 }
  0xaa   :  { %349 = vmatprep.mubr.f32.mxu0 %v151_v37  ;;  %429 = vmatprep.mubr.f32.mxu1 %v183_v38 }
  0xad   :  { %350 = vmatmul.mubr.f32.gmra.mrb[26].mxu0 %v150_v39  ;;  %430 = vmatmul.mubr.f32.gmra.mrb[26].mxu1 %v182_v40  ;;  %v581_v39 = vld [vmem:[#allocation8 + $0x28] sm:$0xff] }
  0xae   :  { %354 = vmatprep.mubr.f32.mxu0 %v153_v41  ;;  %434 = vmatprep.mubr.f32.mxu1 %v185_v42  ;;  %v597_v40 = vld [vmem:[#allocation8 + $0xa8] sm:$0xff] }
  0xb1   :  { %355 = vmatmul.mubr.f32.gmra.mrb[28].mxu0 %v152_v43  ;;  %435 = vmatmul.mubr.f32.gmra.mrb[28].mxu1 %v184_v44 }
  0xb2   :  { %359 = vmatprep.mubr.f32.mxu0 %v155_v45  ;;  %439 = vmatprep.mubr.f32.mxu1 %v187_v46 }
  0xb5   :  { %360 = vmatmul.mubr.f32.gmra.mrb[30].mxu0 %v154_v47  ;;  %440 = vmatmul.mubr.f32.gmra.mrb[30].mxu1 %v186_v48  ;;  %v613_v47 = vmul.f32 0.5, %v581_v39  ;;  %v629_v48 = vmul.f32 0.5, %v597_v40 }
 0x14c   :  { %v286_v53 = vpop.f32.mrb[0].mxu0  ;;  %v366_v54 = vpop.f32.mrb[0].mxu1 }
 0x14d   :  { %v544_v57 = vmul.f32 0.5, %v286_v53  ;;  %v560_v58 = vmul.f32 0.5, %v366_v54  ;;  %v288_v59 = vpop.f32.mrb[1].mxu0  ;;  %v368_v60 = vpop.f32.mrb[1].mxu1 }
 0x14f   :  { %v640_v61 = vadd.f32 %v608_v51, %v544_v57  ;;  %v656_v62 = vadd.f32 %v624_v52, %v560_v58  ;;  %v582_v51 = vld [vmem:[#allocation8 + $0x30] sm:$0xff] }
 0x150   :  { %v291_v1 = vpop.f32.mrb[2].mxu0  ;;  %v371_v2 = vpop.f32.mrb[2].mxu1  ;;  %v598_v52 = vld [vmem:[#allocation8 + $0xb0] sm:$0xff]  ;;  %v614_v59 = vmul.f32 0.5, %v582_v51 }
 0x151   :  { %672 = vst [vmem:[#allocation9] sm:$0xff] %v640_v61  ;;  %688 = vst [vmem:[#allocation9 + $0x80] sm:$0xff] %v656_v62  ;;  %v545_v5 = vmul.f32 0.5, %v291_v1  ;;  %v561_v6 = vmul.f32 0.5, %v371_v2  ;;  %v293_v7 = vpop.f32.mrb[3].mxu0  ;;  %v373_v8 = vpop.f32.mrb[3].mxu1 }
 0x152   :  { %v630_v60 = vmul.f32 0.5, %v598_v52 }
 0x153   :  { %v641_v9 = vadd.f32 %v609_v63, %v545_v5  ;;  %v657_v10 = vadd.f32 %v625_v0, %v561_v6  ;;  %v583_v63 = vld [vmem:[#allocation8 + $0x38] sm:$0xff] }
 0x154   :  { %v296_v13 = vpop.f32.mrb[4].mxu0  ;;  %v376_v14 = vpop.f32.mrb[4].mxu1  ;;  %v599_v0 = vld [vmem:[#allocation8 + $0xb8] sm:$0xff]  ;;  %v615_v7 = vmul.f32 0.5, %v583_v63 }
 0x155   :  { %673 = vst [vmem:[#allocation9 + $0x8] sm:$0xff] %v641_v9  ;;  %689 = vst [vmem:[#allocation9 + $0x88] sm:$0xff] %v657_v10  ;;  %v546_v17 = vmul.f32 0.5, %v296_v13  ;;  %v562_v18 = vmul.f32 0.5, %v376_v14  ;;  %v298_v19 = vpop.f32.mrb[5].mxu0  ;;  %v378_v20 = vpop.f32.mrb[5].mxu1 }
 0x156   :  { %v631_v8 = vmul.f32 0.5, %v599_v0 }
 0x157   :  { %v642_v21 = vadd.f32 %v610_v11, %v546_v17  ;;  %v658_v22 = vadd.f32 %v626_v12, %v562_v18  ;;  %v584_v11 = vld [vmem:[#allocation8 + $0x40] sm:$0xff] }
 0x158   :  { %v301_v25 = vpop.f32.mrb[6].mxu0  ;;  %v381_v26 = vpop.f32.mrb[6].mxu1  ;;  %v600_v12 = vld [vmem:[#allocation8 + $0xc0] sm:$0xff]  ;;  %v616_v19 = vmul.f32 0.5, %v584_v11 }
 0x159   :  { %674 = vst [vmem:[#allocation9 + $0x10] sm:$0xff] %v642_v21  ;;  %690 = vst [vmem:[#allocation9 + $0x90] sm:$0xff] %v658_v22  ;;  %v547_v29 = vmul.f32 0.5, %v301_v25  ;;  %v563_v30 = vmul.f32 0.5, %v381_v26  ;;  %v303_v31 = vpop.f32.mrb[7].mxu0  ;;  %v383_v32 = vpop.f32.mrb[7].mxu1 }
 0x15a   :  { %v632_v20 = vmul.f32 0.5, %v600_v12 }
 0x15b   :  { %v643_v33 = vadd.f32 %v611_v23, %v547_v29  ;;  %v659_v34 = vadd.f32 %v627_v24, %v563_v30  ;;  %v585_v23 = vld [vmem:[#allocation8 + $0x48] sm:$0xff] }
 0x15c   :  { %v306_v37 = vpop.f32.mrb[8].mxu0  ;;  %v386_v38 = vpop.f32.mrb[8].mxu1  ;;  %v601_v24 = vld [vmem:[#allocation8 + $0xc8] sm:$0xff]  ;;  %v617_v31 = vmul.f32 0.5, %v585_v23 }
 0x15d   :  { %675 = vst [vmem:[#allocation9 + $0x18] sm:$0xff] %v643_v33  ;;  %691 = vst [vmem:[#allocation9 + $0x98] sm:$0xff] %v659_v34  ;;  %v548_v41 = vmul.f32 0.5, %v306_v37  ;;  %v564_v42 = vmul.f32 0.5, %v386_v38  ;;  %v308_v43 = vpop.f32.mrb[9].mxu0  ;;  %v388_v44 = vpop.f32.mrb[9].mxu1 }
 0x15e   :  { %v633_v32 = vmul.f32 0.5, %v601_v24 }
 0x15f   :  { %v644_v45 = vadd.f32 %v612_v35, %v548_v41  ;;  %v660_v46 = vadd.f32 %v628_v36, %v564_v42  ;;  %v586_v35 = vld [vmem:[#allocation8 + $0x50] sm:$0xff] }
 0x160   :  { %v311_v49 = vpop.f32.mrb[10].mxu0  ;;  %v391_v50 = vpop.f32.mrb[10].mxu1  ;;  %v602_v36 = vld [vmem:[#allocation8 + $0xd0] sm:$0xff]  ;;  %v618_v43 = vmul.f32 0.5, %v586_v35 }
 0x161   :  { %676 = vst [vmem:[#allocation9 + $0x20] sm:$0xff] %v644_v45  ;;  %692 = vst [vmem:[#allocation9 + $0xa0] sm:$0xff] %v660_v46  ;;  %v549_v53 = vmul.f32 0.5, %v311_v49  ;;  %v565_v54 = vmul.f32 0.5, %v391_v50  ;;  %v313_v55 = vpop.f32.mrb[11].mxu0  ;;  %v393_v56 = vpop.f32.mrb[11].mxu1 }
 0x162   :  { %v634_v44 = vmul.f32 0.5, %v602_v36 }
 0x163   :  { %v645_v57 = vadd.f32 %v613_v47, %v549_v53  ;;  %v661_v58 = vadd.f32 %v629_v48, %v565_v54  ;;  %v587_v47 = vld [vmem:[#allocation8 + $0x58] sm:$0xff] }
 0x164   :  { %v316_v61 = vpop.f32.mrb[12].mxu0  ;;  %v396_v62 = vpop.f32.mrb[12].mxu1  ;;  %v603_v48 = vld [vmem:[#allocation8 + $0xd8] sm:$0xff]  ;;  %v619_v55 = vmul.f32 0.5, %v587_v47 }
 0x165   :  { %677 = vst [vmem:[#allocation9 + $0x28] sm:$0xff] %v645_v57  ;;  %693 = vst [vmem:[#allocation9 + $0xa8] sm:$0xff] %v661_v58  ;;  %v550_v1 = vmul.f32 0.5, %v316_v61  ;;  %v566_v2 = vmul.f32 0.5, %v396_v62  ;;  %v318_v3 = vpop.f32.mrb[13].mxu0  ;;  %v398_v4 = vpop.f32.mrb[13].mxu1 }
 0x166   :  { %v635_v56 = vmul.f32 0.5, %v603_v48 }
 0x167   :  { %v646_v5 = vadd.f32 %v614_v59, %v550_v1  ;;  %v662_v6 = vadd.f32 %v630_v60, %v566_v2  ;;  %v588_v59 = vld [vmem:[#allocation8 + $0x60] sm:$0xff] }
 0x168   :  { %v321_v9 = vpop.f32.mrb[14].mxu0  ;;  %v401_v10 = vpop.f32.mrb[14].mxu1  ;;  %v604_v60 = vld [vmem:[#allocation8 + $0xe0] sm:$0xff]  ;;  %v620_v3 = vmul.f32 0.5, %v588_v59 }
 0x169   :  { %678 = vst [vmem:[#allocation9 + $0x30] sm:$0xff] %v646_v5  ;;  %694 = vst [vmem:[#allocation9 + $0xb0] sm:$0xff] %v662_v6  ;;  %v551_v13 = vmul.f32 0.5, %v321_v9  ;;  %v567_v14 = vmul.f32 0.5, %v401_v10  ;;  %v323_v15 = vpop.f32.mrb[15].mxu0  ;;  %v403_v16 = vpop.f32.mrb[15].mxu1 }
 0x16a   :  { %v636_v4 = vmul.f32 0.5, %v604_v60 }
 0x16b   :  { %v647_v17 = vadd.f32 %v615_v7, %v551_v13  ;;  %v663_v18 = vadd.f32 %v631_v8, %v567_v14  ;;  %v589_v7 = vld [vmem:[#allocation8 + $0x68] sm:$0xff] }
 0x16c   :  { %v326_v21 = vpop.f32.mrb[16].mxu0  ;;  %v406_v22 = vpop.f32.mrb[16].mxu1  ;;  %v605_v8 = vld [vmem:[#allocation8 + $0xe8] sm:$0xff]  ;;  %v621_v15 = vmul.f32 0.5, %v589_v7 }
 0x16d   :  { %679 = vst [vmem:[#allocation9 + $0x38] sm:$0xff] %v647_v17  ;;  %695 = vst [vmem:[#allocation9 + $0xb8] sm:$0xff] %v663_v18  ;;  %v552_v25 = vmul.f32 0.5, %v326_v21  ;;  %v568_v26 = vmul.f32 0.5, %v406_v22  ;;  %v328_v27 = vpop.f32.mrb[17].mxu0  ;;  %v408_v28 = vpop.f32.mrb[17].mxu1 }
 0x16e   :  { %v637_v16 = vmul.f32 0.5, %v605_v8 }
 0x16f   :  { %v648_v29 = vadd.f32 %v616_v19, %v552_v25  ;;  %v664_v30 = vadd.f32 %v632_v20, %v568_v26  ;;  %v590_v19 = vld [vmem:[#allocation8 + $0x70] sm:$0xff] }
 0x170   :  { %v331_v33 = vpop.f32.mrb[18].mxu0  ;;  %v411_v34 = vpop.f32.mrb[18].mxu1  ;;  %v606_v20 = vld [vmem:[#allocation8 + $0xf0] sm:$0xff]  ;;  %v622_v27 = vmul.f32 0.5, %v590_v19 }
 0x171   :  { %680 = vst [vmem:[#allocation9 + $0x40] sm:$0xff] %v648_v29  ;;  %696 = vst [vmem:[#allocation9 + $0xc0] sm:$0xff] %v664_v30  ;;  %v553_v37 = vmul.f32 0.5, %v331_v33  ;;  %v569_v38 = vmul.f32 0.5, %v411_v34  ;;  %v333_v39 = vpop.f32.mrb[19].mxu0  ;;  %v413_v40 = vpop.f32.mrb[19].mxu1 }
 0x172   :  { %v638_v28 = vmul.f32 0.5, %v606_v20 }
 0x173   :  { %v649_v41 = vadd.f32 %v617_v31, %v553_v37  ;;  %v665_v42 = vadd.f32 %v633_v32, %v569_v38  ;;  %v591_v31 = vld [vmem:[#allocation8 + $0x78] sm:$0xff] }
 0x174   :  { %v336_v45 = vpop.f32.mrb[20].mxu0  ;;  %v416_v46 = vpop.f32.mrb[20].mxu1  ;;  %v607_v32 = vld [vmem:[#allocation8 + $0xf8] sm:$0xff]  ;;  %v623_v39 = vmul.f32 0.5, %v591_v31 }
 0x175   :  { %681 = vst [vmem:[#allocation9 + $0x48] sm:$0xff] %v649_v41  ;;  %697 = vst [vmem:[#allocation9 + $0xc8] sm:$0xff] %v665_v42  ;;  %v554_v49 = vmul.f32 0.5, %v336_v45  ;;  %v570_v50 = vmul.f32 0.5, %v416_v46  ;;  %v338_v51 = vpop.f32.mrb[21].mxu0  ;;  %v418_v52 = vpop.f32.mrb[21].mxu1 }
 0x176   :  { %v639_v40 = vmul.f32 0.5, %v607_v32 }
 0x177   :  { %v650_v53 = vadd.f32 %v618_v43, %v554_v49  ;;  %v666_v54 = vadd.f32 %v634_v44, %v570_v50 }
 0x178   :  { %v341_v57 = vpop.f32.mrb[22].mxu0  ;;  %v421_v58 = vpop.f32.mrb[22].mxu1 }
 0x179   :  { %682 = vst [vmem:[#allocation9 + $0x50] sm:$0xff] %v650_v53  ;;  %698 = vst [vmem:[#allocation9 + $0xd0] sm:$0xff] %v666_v54  ;;  %v555_v61 = vmul.f32 0.5, %v341_v57  ;;  %v571_v62 = vmul.f32 0.5, %v421_v58  ;;  %v343_v63 = vpop.f32.mrb[23].mxu0  ;;  %v423_v0 = vpop.f32.mrb[23].mxu1 }
 0x17b   :  { %v651_v1 = vadd.f32 %v619_v55, %v555_v61  ;;  %v667_v2 = vadd.f32 %v635_v56, %v571_v62 }
 0x17c   :  { %v346_v5 = vpop.f32.mrb[24].mxu0  ;;  %v426_v6 = vpop.f32.mrb[24].mxu1 }
 0x17d   :  { %683 = vst [vmem:[#allocation9 + $0x58] sm:$0xff] %v651_v1  ;;  %699 = vst [vmem:[#allocation9 + $0xd8] sm:$0xff] %v667_v2  ;;  %v556_v9 = vmul.f32 0.5, %v346_v5  ;;  %v572_v10 = vmul.f32 0.5, %v426_v6  ;;  %v348_v11 = vpop.f32.mrb[25].mxu0  ;;  %v428_v12 = vpop.f32.mrb[25].mxu1 }
 0x17f   :  { %v652_v13 = vadd.f32 %v620_v3, %v556_v9  ;;  %v668_v14 = vadd.f32 %v636_v4, %v572_v10 }
 0x180   :  { %v351_v17 = vpop.f32.mrb[26].mxu0  ;;  %v431_v18 = vpop.f32.mrb[26].mxu1 }
 0x181   :  { %684 = vst [vmem:[#allocation9 + $0x60] sm:$0xff] %v652_v13  ;;  %700 = vst [vmem:[#allocation9 + $0xe0] sm:$0xff] %v668_v14  ;;  %v557_v21 = vmul.f32 0.5, %v351_v17  ;;  %v573_v22 = vmul.f32 0.5, %v431_v18  ;;  %v353_v23 = vpop.f32.mrb[27].mxu0  ;;  %v433_v24 = vpop.f32.mrb[27].mxu1 }
 0x183   :  { %v653_v25 = vadd.f32 %v621_v15, %v557_v21  ;;  %v669_v26 = vadd.f32 %v637_v16, %v573_v22 }
 0x184   :  { %v356_v29 = vpop.f32.mrb[28].mxu0  ;;  %v436_v30 = vpop.f32.mrb[28].mxu1 }
 0x185   :  { %685 = vst [vmem:[#allocation9 + $0x68] sm:$0xff] %v653_v25  ;;  %701 = vst [vmem:[#allocation9 + $0xe8] sm:$0xff] %v669_v26  ;;  %v558_v33 = vmul.f32 0.5, %v356_v29  ;;  %v574_v34 = vmul.f32 0.5, %v436_v30  ;;  %v358_v35 = vpop.f32.mrb[29].mxu0  ;;  %v438_v36 = vpop.f32.mrb[29].mxu1 }
 0x187   :  { %v654_v37 = vadd.f32 %v622_v27, %v558_v33  ;;  %v670_v38 = vadd.f32 %v638_v28, %v574_v34 }
 0x188   :  { %v361_v41 = vpop.f32.mrb[30].mxu0  ;;  %v441_v42 = vpop.f32.mrb[30].mxu1 }
 0x189   :  { %686 = vst [vmem:[#allocation9 + $0x70] sm:$0xff] %v654_v37  ;;  %702 = vst [vmem:[#allocation9 + $0xf0] sm:$0xff] %v670_v38  ;;  %v559_v43 = vmul.f32 0.5, %v361_v41  ;;  %v575_v44 = vmul.f32 0.5, %v441_v42  ;;  %v363_v45 = vpop.f32.mrb[31].mxu0  ;;  %v443_v46 = vpop.f32.mrb[31].mxu1 }
 0x18b   :  { %v655_v47 = vadd.f32 %v623_v39, %v559_v43  ;;  %v671_v48 = vadd.f32 %v639_v40, %v575_v44 }
 0x18d   :  { %687 = vst [vmem:[#allocation9 + $0x78] sm:$0xff] %v655_v47  ;;  %703 = vst [vmem:[#allocation9 + $0xf8] sm:$0xff] %v671_v48 }
 0x18e   :  { %888 = shalt.err (!%p885_p0)
}
 0x18f   :  { %s889_s29 = scalar_lea.hbm %s1026_s3, 4096 }
 0x190   :  { %p890_p1 = scmp.ne.s32.totalorder %s1026_s3, %s889_s29  ;;  %p893_p2 = scmp.lt.u32.totalorder %s889_s29, %s1026_s3 }
 0x192   :  { %p895_p3 = pnand %p893_p2, %p890_p1 }
 0x194   :  { %898 = shalt.err (!%p895_p3)
}
 0x195   :  { %715 = dma.vmem_to_hbm [thread:$0]  %s710_s25, 4096, %s1026_s3, [#allocation5], %s906_s22, %s906_s22, %s907_s23  }
 0x196   :  { %903 = dma.done.wait [#allocation5], 4096  }
 0x197   :  { %904 = vsyncadd [#allocation5], 4294963200 }
 0x198   :  { %719 = vsyncpa [#allocation4], 1 }
 0x199   :  { %720 = vsyncpa [#allocation7], 1 }
 0x19a   :  { %721 = vsyncpa [#allocation5], 1 }

</bundles_post_ra>
